<compile_context>
chip_gen: v6e
topology: v6e:2x2x1
jax: 0.10.0
libtpu: 0.0.40
codegen_flags: <defaults>
</compile_context>

<pallas_src>
import math

import jax
import jax.numpy as jnp
from jax.experimental import pallas as pl
from jax.experimental.pallas import tpu as pltpu


# ----------------------------------------------------------------------------
# Fused kernel: one-hot gather (MXU) -> Swish -> Linear
# ----------------------------------------------------------------------------

def _make_time_embedding_kernel(batch, num_steps):
    def kernel(t_ref, fused_ref, w2_ref, b2_ref, o_ref):
        # t_ref: (batch, 1) int32 in VMEM.  One-hot via a single broadcast
        # compare against the lane iota: (batch, T).
        col_iota = jax.lax.broadcasted_iota(jnp.int32, (batch, num_steps), 1)
        onehot = (col_iota == t_ref[...]).astype(jnp.float32)

        # Gather + first Linear in one MXU push: (B, T) @ (T, dim_out).
        # fused = table @ w1 + b1 was folded in the wrapper; onehot rows sum
        # to exactly one, so the +b1 term is carried through exactly.
        h = jnp.dot(onehot, fused_ref[...], preferred_element_type=jnp.float32)

        # Swish.
        h = h * jax.nn.sigmoid(h)

        # Second Linear.
        o_ref[...] = (jnp.dot(h, w2_ref[...],
                              preferred_element_type=jnp.float32)
                      + b2_ref[...])
    return kernel


def time_embedding_forward(params, t):
    """t: (batch,) int32 timesteps -> (batch, dim_out) float32 embedding."""
    table = params["table"]            # (T, dim_in)
    w1, b1 = params["l1"]              # (dim_in, dim_out), (dim_out,)
    w2, b2 = params["l2"]              # (dim_out, dim_out), (dim_out,)
    T, dim_in = table.shape
    dim_out = w1.shape[1]
    batch = t.shape[0]

    # Fold the embedding table through the first Linear (tiny XLA matmul,
    # differentiable w.r.t. w1/b1): fused[k] = table[k] @ w1 + b1.
    fused = table @ w1 + b1[None, :]                      # (T, dim_out)

    t2d = t.astype(jnp.int32).reshape(batch, 1)

    grid_spec = pl.GridSpec(
        grid=(1,),                                        # tiny fused op
        in_specs=[
            pl.BlockSpec((batch, 1), lambda i: (0, 0)),          # t
            pl.BlockSpec((T, dim_out), lambda i: (0, 0)),        # fused
            pl.BlockSpec((dim_out, dim_out), lambda i: (0, 0)),  # w2
            pl.BlockSpec((1, dim_out), lambda i: (0, 0)),        # b2
        ],
        out_specs=pl.BlockSpec((batch, dim_out), lambda i: (0, 0)),
    )

    return pl.pallas_call(
        _make_time_embedding_kernel(batch, T),
        out_shape=jax.ShapeDtypeStruct((batch, dim_out), jnp.float32),
        grid_spec=grid_spec,
        compiler_params=pltpu.CompilerParams(
            dimension_semantics=("arbitrary",)),
    )(t2d, fused, w2, b2.reshape(1, dim_out))


# ----------------------------------------------------------------------------
# Parameter construction (mirrors the torch module; xavier_normal, zero bias)
# ----------------------------------------------------------------------------

def init_time_embedding_params(seed, T, dim_in, dim_out):
    assert dim_in % 2 == 0
    # Sinusoidal table, exactly as in the spec (positive exponent, interleaved
    # sin/cos along the last dim).
    freq = jnp.exp(jnp.arange(0, dim_in, 2, dtype=jnp.float32)
                   / dim_in * math.log(10000.0))                # (dim_in/2,)
    pos = jnp.arange(T, dtype=jnp.float32)
    e = pos[:, None] * freq[None, :]                            # (T, dim_in/2)
    table = jnp.stack([jnp.sin(e), jnp.cos(e)], axis=-1).reshape(T, dim_in)

    key = jax.random.PRNGKey(seed)
    k1, k2 = jax.random.split(key)

    def xavier_normal(k, fan_in, fan_out):
        std = math.sqrt(2.0 / (fan_in + fan_out))
        return std * jax.random.normal(k, (fan_in, fan_out), jnp.float32)

    w1 = xavier_normal(k1, dim_in, dim_out)
    b1 = jnp.zeros((dim_out,), jnp.float32)
    w2 = xavier_normal(k2, dim_out, dim_out)
    b2 = jnp.zeros((dim_out,), jnp.float32)
    return {"table": table, "l1": (w1, b1), "l2": (w2, b2)}


def time_embedding_ref(params, t):
    """Pure-JAX reference (matches the PyTorch forward)."""
    emb = params["table"][t]
    w1, b1 = params["l1"]
    w2, b2 = params["l2"]
    h = emb @ w1 + b1
    h = h * jax.nn.sigmoid(h)
    return h @ w2 + b2


# ----------------------------------------------------------------------------
# Main
# ----------------------------------------------------------------------------

if __name__ == "__main__":
    T = 16          # number of diffusion timesteps in this small config
    dim_in = 32     # sinusoidal embedding width (must be even)
    dim_out = 128   # = 4 * dim in the DDPM UNet; lane-dense (multiple of 128)
    batch = 2

    params = init_time_embedding_params(0, T, dim_in, dim_out)

    key = jax.random.PRNGKey(0)
    t = jax.random.randint(key, (batch,), 0, T, dtype=jnp.int32)

    out = time_embedding_forward(params, t)
    out = jax.block_until_ready(out)
    assert out.shape == (batch, dim_out), out.shape
    assert bool(jnp.all(jnp.isfinite(out)))

    ref = time_embedding_ref(params, t)
    max_err = float(jnp.max(jnp.abs(out - ref)))
    assert max_err < 1e-4, f"max abs err vs reference: {max_err}"

    print("KERNEL_OK")
</pallas_src>

<mosaic_0001>
module attributes {stable_mosaic.version = 11 : i64} {
  func.func @kernel(%arg0: i32, %arg1: memref<2x1xi32, #tpu.memory_space<vmem>>, %arg2: memref<16x128xf32, #tpu.memory_space<vmem>>, %arg3: memref<128x128xf32, #tpu.memory_space<vmem>>, %arg4: memref<1x128xf32, #tpu.memory_space<vmem>>, %arg5: memref<2x128xf32, #tpu.memory_space<vmem>>) attributes {dimension_semantics = [#tpu.dimension_semantics<arbitrary>], iteration_bounds = array<i64: 1>, scalar_prefetch = 0 : i64, scratch_operands = 0 : i64, tpu.core_type = #tpu.core_type<tc>, window_params = [{pipeline_mode = #tpu.pipeline_mode<synchronous>, transform_indices = @transform_0, window_bounds = array<i64: 2, 1>}, {pipeline_mode = #tpu.pipeline_mode<synchronous>, transform_indices = @transform_1, window_bounds = array<i64: 16, 128>}, {pipeline_mode = #tpu.pipeline_mode<synchronous>, transform_indices = @transform_2, window_bounds = array<i64: 128, 128>}, {pipeline_mode = #tpu.pipeline_mode<synchronous>, transform_indices = @transform_3, window_bounds = array<i64: 1, 128>}, {pipeline_mode = #tpu.pipeline_mode<synchronous>, transform_indices = @transform_4, window_bounds = array<i64: 2, 128>}]} {
    %0 = tpu.iota {dimensions = array<i32: 1>} : vector<2x16xi32>
    %c0 = arith.constant 0 : index
    %c0_0 = arith.constant 0 : index
    %1 = vector.load %arg1[%c0, %c0_0] : memref<2x1xi32, #tpu.memory_space<vmem>>, vector<2x1xi32>
    %2 = vector.broadcast %1 : vector<2x1xi32> to vector<2x16xi32>
    %3 = arith.cmpi eq, %0, %2 : vector<2x16xi32>
    %4 = arith.extui %3 : vector<2x16xi1> to vector<2x16xi32>
    %5 = arith.sitofp %4 : vector<2x16xi32> to vector<2x16xf32>
    %c0_1 = arith.constant 0 : index
    %c0_2 = arith.constant 0 : index
    %6 = vector.load %arg2[%c0_1, %c0_2] : memref<16x128xf32, #tpu.memory_space<vmem>>, vector<16x128xf32>
    %cst = arith.constant dense<0.000000e+00> : vector<2x128xf32>
    %7 = tpu.matmul %5, %6, %cst {dimension_numbers = #tpu.dot_dimension_numbers<[1], [0], [0], [1], [0, 0, 1, 1], [], []>} : vector<2x16xf32>, vector<16x128xf32>, vector<2x128xf32> -> vector<2x128xf32>
    %8 = arith.negf %7 : vector<2x128xf32>
    %9 = math.exp %8 : vector<2x128xf32>
    %cst_3 = arith.constant 1.000000e+00 : f32
    %10 = vector.broadcast %cst_3 : f32 to vector<2x128xf32>
    %11 = arith.addf %10, %9 : vector<2x128xf32>
    %12 = arith.divf %10, %11 : vector<2x128xf32>
    %13 = arith.mulf %7, %12 : vector<2x128xf32>
    %c0_4 = arith.constant 0 : index
    %c0_5 = arith.constant 0 : index
    %14 = vector.load %arg3[%c0_4, %c0_5] : memref<128x128xf32, #tpu.memory_space<vmem>>, vector<128x128xf32>
    %cst_6 = arith.constant dense<0.000000e+00> : vector<2x128xf32>
    %15 = tpu.matmul %13, %14, %cst_6 {dimension_numbers = #tpu.dot_dimension_numbers<[1], [0], [0], [1], [0, 0, 1, 1], [], []>} : vector<2x128xf32>, vector<128x128xf32>, vector<2x128xf32> -> vector<2x128xf32>
    %c0_7 = arith.constant 0 : index
    %c0_8 = arith.constant 0 : index
    %16 = vector.load %arg4[%c0_7, %c0_8] : memref<1x128xf32, #tpu.memory_space<vmem>>, vector<1x128xf32>
    %17 = vector.broadcast %16 : vector<1x128xf32> to vector<2x128xf32>
    %18 = arith.addf %15, %17 : vector<2x128xf32>
    %c0_9 = arith.constant 0 : index
    %c0_10 = arith.constant 0 : index
    %19 = vector.load %arg5[%c0_9, %c0_10] : memref<2x128xf32, #tpu.memory_space<vmem>>, vector<2x128xf32>
    tpu.vector_store %arg5[%c0_9, %c0_10], %18 {strides = array<i32>} : memref<2x128xf32, #tpu.memory_space<vmem>>, vector<2x128xf32>,
    return
  }
  func.func @transform_0(%arg0: i32) -> (i32, i32) {
    %c0_i32 = arith.constant 0 : i32
    %c0_i32_0 = arith.constant 0 : i32
    %c0_i32_1 = arith.constant 0 : i32
    return %c0_i32, %c0_i32_0 : i32, i32
  }
  func.func @transform_1(%arg0: i32) -> (i32, i32) {
    %c0_i32 = arith.constant 0 : i32
    %c0_i32_0 = arith.constant 0 : i32
    %c0_i32_1 = arith.constant 0 : i32
    return %c0_i32, %c0_i32_0 : i32, i32
  }
  func.func @transform_2(%arg0: i32) -> (i32, i32) {
    %c0_i32 = arith.constant 0 : i32
    %c0_i32_0 = arith.constant 0 : i32
    %c0_i32_1 = arith.constant 0 : i32
    return %c0_i32, %c0_i32_0 : i32, i32
  }
  func.func @transform_3(%arg0: i32) -> (i32, i32) {
    %c0_i32 = arith.constant 0 : i32
    %c0_i32_0 = arith.constant 0 : i32
    %c0_i32_1 = arith.constant 0 : i32
    return %c0_i32, %c0_i32_0 : i32, i32
  }
  func.func @transform_4(%arg0: i32) -> (i32, i32) {
    %c0_i32 = arith.constant 0 : i32
    %c0_i32_0 = arith.constant 0 : i32
    %c0_i32_1 = arith.constant 0 : i32
    return %c0_i32, %c0_i32_0 : i32, i32
  }
}

</mosaic_0001>

<bundles_post_ra>
// kernel: tpu_custom_call.1
= control target key start
LH: loop header
LB: loop body
LE: loop exit
PB: predicated region body
PF: predicated region fallthrough
CT: control target
= control target key end

     0   :  { %9 = vsyncpa [#allocation3], 0  ;;  %s462_s0 = inlined_call_operand.vmem [shape: s32[2,1], index: 0, kind: input, shape index: {}]   ;;  %s463_s1 = inlined_call_operand.hbm [shape: f32[16,128], index: 1, kind: input, shape index: {}]   ;;  %s464_s2 = inlined_call_operand.hbm [shape: f32[128,128], index: 2, kind: input, shape index: {}]   ;;  %s465_s3 = inlined_call_operand.vmem [shape: f32[1,128], index: 3, kind: input, shape index: {}]   ;;  %s466_s4 = inlined_call_operand.hbm [shape: f32[2,128], index: 4, kind: output, shape index: {}]  }
   0x1   :  { %10 = vsyncpa [#allocation6], 0 }
   0x2   :  { %11 = vsyncpa [#allocation4], 0  ;;  %s393_s15 = smov [#allocation2]  }
   0x3   :  { %s19_s16 = sshll.u32 %s393_s15, 4  ;;  %s20_s16 = int_to_ptr.vmem [resolvable:$true] %s19_s16 }
   0x4   :  { %s335_s17 = scalar_lea.vmem %s20_s16, 256  ;;  %p340_p1 = scmp.lt.s32.totalorder %s20_s16, %s20_s16 }
   0x5   :  { %p336_p0 = scmp.ne.s32.totalorder %s20_s16, %s335_s17  ;;  %p341_p2 = scmp.lt.s32.totalorder %s335_s17, %s335_s17 }
   0x7   :  { %p342_p3 = por %p341_p2, %p340_p1 }
   0x9   :  { %p343_p4 = pnand %p342_p3, %p336_p0 }
   0xb   :  { %346 = shalt.err (!%p343_p4)
}
   0xc   :  { %s394_s18 = smov 128   ;;  %s395_s19 = smov 8  }
   0xd   :  { %25 = dma.hbm_to_vmem [thread:$0]  %s463_s1, 256, %s20_s16, [#allocation3], %s394_s18, %s394_s18, %s395_s19  }
   0xe   :  { %s396_s22 = smov [#allocation5]  }
   0xf   :  { %s31_s23 = sshll.u32 %s396_s22, 4  ;;  %s32_s23 = int_to_ptr.vmem [resolvable:$true] %s31_s23 }
  0x10   :  { %s355_s24 = scalar_lea.vmem %s32_s23, 2048  ;;  %p360_p6 = scmp.lt.s32.totalorder %s32_s23, %s32_s23 }
  0x11   :  { %p356_p5 = scmp.ne.s32.totalorder %s32_s23, %s355_s24  ;;  %p361_p7 = scmp.lt.s32.totalorder %s355_s24, %s355_s24 }
  0x13   :  { %p362_p8 = por %p361_p7, %p360_p6 }
  0x15   :  { %p363_p9 = pnand %p362_p8, %p356_p5 }
  0x17   :  { %366 = shalt.err (!%p363_p9)
}
  0x18   :  { %37 = dma.hbm_to_vmem [thread:$0]  %s464_s2, 2048, %s32_s23, [#allocation6], %s394_s18, %s394_s18, %s395_s19  }
  0x19   :  { %387 = dma.done.wait [#allocation3], 256  }
  0x1a   :  { %388 = vsyncadd [#allocation3], 4294967040 }
  0x1b   :  { %389 = dma.done.wait [#allocation6], 2048  }
  0x1c   :  { %390 = vsyncadd [#allocation6], 4294965248  ;;  %v397_v0 = vmov 0   ;;  %v398_v1 = vmov 0.0   ;;  %vm399_vm0 = vmmov 0   ;;  %v56_v3 = vld [vmem:[#allocation2 + $0x8] sm:$0xff]  ;;  %v46_v5 = vlaneseq }
  0x1d   :  { %322 = vset.pattern.permute.xlu0 %v397_v0  ;;  %272 = vmatprep.subr.mxu0 %v398_v1  ;;  %v48_v2 = vld [vmem:[%s462_s0] sm:$0x3]  ;;  %vm57_vm1 = vcmask 130048   ;;  %v153_v9 = vld [vmem:[#allocation5 + $0x78] sm:$0xff]  ;;  %v151_v11 = vld [vmem:[#allocation5 + $0x68] sm:$0xff]  ;;  %s400_s28 = smov [#allocation7]  }
  0x1e   :  { %279 = vmatprep.subr.mxu1 %v398_v1  ;;  %276 = vmatprep.mubr.msk.f32.mxu0 %vm399_vm0, %v398_v1  ;;  %v55_v4 = vld [vmem:[#allocation2] sm:$0xff]  ;;  %v47_v6 = vand.u32 127, %v46_v5  ;;  %v150_v12 = vld [vmem:[#allocation5 + $0x60] sm:$0xff]  ;;  %v149_v13 = vld [vmem:[#allocation5 + $0x58] sm:$0xff]  ;;  %s238_s29 = sshll.u32 %s400_s28, 4  ;;  %s239_s29 = int_to_ptr.vmem [resolvable:$true] %s238_s29 }
  0x1f   :  { %311 = vmatprep.mubr.msk.f32.mxu1 %vm399_vm0, %v398_v1  ;;  %50 = vperm.xlu0 %322, %v48_v2   ;;  %v152_v10 = vld [vmem:[#allocation5 + $0x70] sm:$0xff]  ;;  %v147_v15 = vld [vmem:[#allocation5 + $0x48] sm:$0xff]  ;;  %v146_v16 = vld [vmem:[#allocation5 + $0x40] sm:$0xff]  ;;  %s367_s30 = scalar_lea.vmem %s239_s29, 32  ;;  %p372_p11 = scmp.lt.s32.totalorder %s239_s29, %s239_s29 }
  0x20   :  { %273 = vmatpush3.msra.mxu0 %v56_v3  ;;  %280 = vmatpush3.msra.mxu1 %v153_v9  ;;  %v148_v14 = vld [vmem:[#allocation5 + $0x50] sm:$0xff]  ;;  %v145_v17 = vld [vmem:[#allocation5 + $0x38] sm:$0xff]  ;;  %v143_v19 = vld [vmem:[#allocation5 + $0x28] sm:$0xff]  ;;  %p368_p10 = scmp.ne.s32.totalorder %s239_s29, %s367_s30  ;;  %p373_p12 = scmp.lt.s32.totalorder %s367_s30, %s367_s30 }
  0x21   :  { %274 = vmatprep.subr.mxu0 %v398_v1  ;;  %281 = vmatprep.subr.mxu1 %v398_v1  ;;  %v144_v18 = vld [vmem:[#allocation5 + $0x30] sm:$0xff]  ;;  %v142_v20 = vld [vmem:[#allocation5 + $0x20] sm:$0xff]  ;;  %v141_v21 = vld [vmem:[#allocation5 + $0x18] sm:$0xff] }
  0x22   :  { %275 = vmatpush3.msra.mxu0 %v55_v4  ;;  %282 = vmatpush3.msra.mxu1 %v152_v10  ;;  %v140_v22 = vld [vmem:[#allocation5 + $0x10] sm:$0xff]  ;;  %v139_v23 = vld [vmem:[#allocation5 + $0x8] sm:$0xff]  ;;  %v138_v24 = vld [vmem:[#allocation5] sm:$0xff]  ;;  %p374_p13 = por %p373_p12, %p372_p11 }
  0x23   :  { %283 = vmatprep.subr.mxu1 %v398_v1  ;;  %v251_v32 = vld [vmem:[%s465_s3] ss:$0 sm:$0xff] }
  0x24   :  { %284 = vmatpush3.msra.mxu1 %v151_v11  ;;  %p375_p0 = pnand %p374_p13, %p368_p10 }
  0x25   :  { %285 = vmatprep.subr.mxu1 %v398_v1 }
  0x26   :  { %286 = vmatpush3.msra.mxu1 %v150_v12 }
  0x27   :  { %287 = vmatprep.subr.mxu1 %v398_v1 }
  0x28   :  { %288 = vmatpush3.msra.mxu1 %v149_v13 }
  0x29   :  { %289 = vmatprep.subr.mxu1 %v398_v1 }
  0x2a   :  { %290 = vmatpush3.msra.mxu1 %v148_v14 }
  0x2b   :  { %291 = vmatprep.subr.mxu1 %v398_v1 }
  0x2c   :  { %292 = vmatpush3.msra.mxu1 %v147_v15 }
  0x2d   :  { %293 = vmatprep.subr.mxu1 %v398_v1 }
  0x2e   :  { %294 = vmatpush3.msra.mxu1 %v146_v16 }
  0x2f   :  { %295 = vmatprep.subr.mxu1 %v398_v1 }
  0x30   :  { %296 = vmatpush3.msra.mxu1 %v145_v17 }
  0x31   :  { %297 = vmatprep.subr.mxu1 %v398_v1 }
  0x32   :  { %298 = vmatpush3.msra.mxu1 %v144_v18 }
  0x33   :  { %299 = vmatprep.subr.mxu1 %v398_v1 }
  0x34   :  { %300 = vmatpush3.msra.mxu1 %v143_v19 }
  0x35   :  { %301 = vmatprep.subr.mxu1 %v398_v1 }
  0x36   :  { %302 = vmatpush3.msra.mxu1 %v142_v20 }
  0x37   :  { %303 = vmatprep.subr.mxu1 %v398_v1 }
  0x38   :  { %304 = vmatpush3.msra.mxu1 %v141_v21 }
  0x39   :  { %305 = vmatprep.subr.mxu1 %v398_v1 }
  0x3a   :  { %306 = vmatpush3.msra.mxu1 %v140_v22 }
  0x3b   :  { %307 = vmatprep.subr.mxu1 %v398_v1 }
  0x3c   :  { %308 = vmatpush3.msra.mxu1 %v139_v23 }
  0x3d   :  { %309 = vmatprep.subr.mxu1 %v398_v1 }
  0x3e   :  { %310 = vmatpush3.msra.mxu1 %v138_v24 }
  0x9a   :  { %v51_v7 = vpop.permute.xlu0 %50 }
  0x9b   :  { %vm52_vm2 = vcmp.eq.s32.totalorder %v47_v6, %v51_v7 }
  0x9c   :  { %v248_v8 = vsel %vm52_vm2, 1.0, %v398_v1 }
  0x9d   :  { %277 = vmatmul.mubr.msk.f32.vlgmr.msra.gmra.mxu0 %vm57_vm1, %v248_v8 }
 0x15d   :  { %v127_v25 = vpop.f32.mrf.mxu0 }
 0x15e   :  { %v250_v26 = vmul.f32 -1.442695, %v127_v25 }
 0x15f   :  { %v278_v27 = vpop.f32.mrf.mxu0 }
 0x160   :  { %323 = vpow2.f32 %v250_v26 }
 0x16d   :  { %v324_v28 = vpop.eup %323 }
 0x16e   :  { %v134_v29 = vadd.f32 1.0, %v324_v28 }
 0x170   :  { %325 = vrcp.f32 %v134_v29 }
 0x17d   :  { %v326_v30 = vpop.eup %325 }
 0x17e   :  { %v137_v31 = vmul.f32 %v326_v30, %v127_v25 }
 0x180   :  { %312 = vmatmul.mubr.f32.vlgmr.msra.gmra.mxu1 %v137_v31 }
 0x240   :  { %v227_v33 = vpop.f32.mrf.mxu1 }
 0x241   :  { %v228_v34 = vadd.f32 %v251_v32, %v227_v33 }
 0x242   :  { %v313_v35 = vpop.f32.mrf.mxu1 }
 0x243   :  { %231 = vst [vmem:[#allocation7] sm:$0x3] %v228_v34 }
 0x244   :  { %378 = shalt.err (!%p375_p0)
}
 0x245   :  { %241 = dma.vmem_to_hbm [thread:$0]  %s239_s29, 32, %s466_s4, [#allocation4]  }
 0x246   :  { %391 = dma.done.wait [#allocation4], 32  }
 0x247   :  { %392 = vsyncadd [#allocation4], 4294967264 }
 0x248   :  { %245 = vsyncpa [#allocation3], 1 }
 0x249   :  { %246 = vsyncpa [#allocation6], 1 }
 0x24a   :  { %247 = vsyncpa [#allocation4], 1 }

</bundles_post_ra>
